<compile_context>
chip_gen: v7x
topology: tpu7x:2x2x1
jax: 0.10.0
libtpu: 0.0.40
codegen_flags: <defaults>
</compile_context>

<pallas_src>
import math

import jax
import jax.numpy as jnp
from jax.experimental import pallas as pl
from jax.experimental.pallas import tpu as pltpu


def _concat_last_kernel(*refs):
    """refs = (*in_refs, out_ref).

    Single lane-dense full-tile store: the lane packing rides the XLU slot,
    avoiding masked vst.msk partial stores at non-128-aligned lane offsets
    (matters most on v5e's single vector-store slot).
    """
    in_refs = refs[:-1]
    out_ref = refs[-1]
    out_ref[...] = jnp.concatenate([r[...] for r in in_refs], axis=-1)


def _sublane_tile(dtype):
    itemsize = jnp.dtype(dtype).itemsize
    return max(8, 32 // max(itemsize, 1))  # 8 for f32, 16 for bf16, 32 for int8


def _pick_tm(M, d_total, dtype):
    """Largest row tile whose double-buffered inputs+output stay ~<= 16 MiB.

    16 MiB live working set keeps us comfortably inside v7x's 64 MiB physical
    VMEM (and the default scoped limits) while being big enough to amortize
    the ~0.35 us/step grid overhead.
    """
    itemsize = jnp.dtype(dtype).itemsize
    sub = _sublane_tile(dtype)
    budget = 16 * 1024 * 1024
    per_row = 4 * d_total * itemsize  # 2x (sum of inputs) + 2x (output), dbl-buffered
    tm = budget // max(per_row, 1)
    tm = min(tm, 1024)
    tm = max((tm // sub) * sub, sub)
    if M <= tm:
        return M  # one tile; block shape equals full array dims
    return tm


def _concat_last_2d(xs, tm=None):
    """Concatenate (M, D_i) arrays along the last axis via a row-tiled Pallas copy."""
    M = int(xs[0].shape[0])
    widths = [int(x.shape[-1]) for x in xs]
    d_total = sum(widths)
    dtype = xs[0].dtype
    itemsize = jnp.dtype(dtype).itemsize

    tm = _pick_tm(M, d_total, dtype) if tm is None else min(int(tm), M)

    # Ragged M: pad to a tile multiple, slice the pad rows off afterwards.
    m_pad = pl.cdiv(M, tm) * tm
    if m_pad != M:
        xs = [jnp.pad(x, ((0, m_pad - M), (0, 0))) for x in xs]

    grid = (m_pad // tm,)
    in_specs = [pl.BlockSpec((tm, d), lambda i: (i, 0)) for d in widths]
    out_spec = pl.BlockSpec((tm, d_total), lambda i: (i, 0))

    # Double-buffered inputs + output working set, plus headroom.
    vmem_needed = 4 * tm * d_total * itemsize
    vmem_limit = int(min(max(vmem_needed + (4 << 20), 32 << 20), 56 << 20))

    total_bytes = 2 * m_pad * d_total * itemsize  # read everything + write everything

    out = pl.pallas_call(
        _concat_last_kernel,
        out_shape=jax.ShapeDtypeStruct((m_pad, d_total), dtype),
        grid=grid,
        in_specs=in_specs,
        out_specs=out_spec,
        compiler_params=pltpu.CompilerParams(
            dimension_semantics=("parallel",),   # shard row tiles across v7x's 2 TCs
            vmem_limit_bytes=vmem_limit,
        ),
        cost_estimate=pl.CostEstimate(
            flops=0, transcendentals=0, bytes_accessed=int(total_bytes)),
    )(*xs)

    if m_pad != M:
        out = out[:M]
    return out


def concatenate(xs, dim=-1):
    """JAX/Pallas equivalent of Concatenate(dim)(xs) == torch.cat(xs, dim)."""
    xs = [jnp.asarray(x) for x in xs]
    ndim = xs[0].ndim
    axis = dim % ndim

    # torch.cat-style type promotion (avoids silently mixing bit patterns).
    dtype = jnp.result_type(*[x.dtype for x in xs])
    xs = [x.astype(dtype) for x in xs]

    # Drop zero-width inputs (would create degenerate BlockSpecs).
    xs_nz = [x for x in xs if x.shape[axis] != 0]
    if not xs_nz:
        out_shape = list(xs[0].shape)
        out_shape[axis] = 0
        return jnp.zeros(tuple(out_shape), dtype)
    if len(xs_nz) == 1:
        return xs_nz[0]
    xs = xs_nz

    lead = xs[0].shape[:axis]
    trail = xs[0].shape[axis + 1:]
    for x in xs:
        assert x.shape[:axis] == lead and x.shape[axis + 1:] == trail, \
            "non-concat dims must match"

    # Row-major layout trick: concat along `axis` is a last-axis concat of the
    # (prod(lead), shape[axis]*prod(trail)) 2-D views. Reshapes are free.
    M = int(math.prod(lead)) if lead else 1
    t = int(math.prod(trail)) if trail else 1
    xs2d = [x.reshape(M, x.shape[axis] * t) for x in xs]

    out2d = _concat_last_2d(xs2d)
    a_total = sum(x.shape[axis] for x in xs)
    return out2d.reshape(*lead, a_total, *trail)


if __name__ == "__main__":
    key = jax.random.PRNGKey(0)
    k1, k2, k3, k4, k5 = jax.random.split(key, 5)

    # 1) dim=-1 concat with non-128-aligned lane widths (32 + 16 + 48).
    a = jax.random.normal(k1, (2, 8, 32), dtype=jnp.float32)
    b = jax.random.normal(k2, (2, 8, 16), dtype=jnp.float32)
    c = jax.random.normal(k3, (2, 8, 48), dtype=jnp.float32)
    out = jax.block_until_ready(concatenate([a, b, c], dim=-1))
    ref = jnp.concatenate([a, b, c], axis=-1)
    assert out.shape == (2, 8, 96) and out.dtype == ref.dtype
    assert bool(jnp.array_equal(out, ref)), "dim=-1 mismatch vs jnp.concatenate"

    # 2) dim=1 (non-last axis) concat: no moveaxis/transpose, pure reshape glue.
    d = jax.random.normal(k4, (2, 3, 8, 16), dtype=jnp.float32)
    e = jax.random.normal(k5, (2, 5, 8, 16), dtype=jnp.float32)
    out2 = jax.block_until_ready(concatenate([d, e], dim=1))
    ref2 = jnp.concatenate([d, e], axis=1)
    assert out2.shape == (2, 8, 8, 16)
    assert bool(jnp.array_equal(out2, ref2)), "dim=1 mismatch vs jnp.concatenate"

    # 3) Multi-tile + ragged-M path (small forced row tile exercises the 1-D
    #    grid, tail padding, and the parallel dimension semantics).
    f = jax.random.normal(k1, (140, 64), dtype=jnp.float32)
    g = jax.random.normal(k2, (140, 32), dtype=jnp.float32)
    out3 = jax.block_until_ready(_concat_last_2d([f, g], tm=64))
    ref3 = jnp.concatenate([f, g], axis=-1)
    assert bool(jnp.array_equal(out3, ref3)), "tiled path mismatch"

    print("KERNEL_OK")
</pallas_src>

<mosaic_0001>
module attributes {stable_mosaic.version = 11 : i64} {
  func.func @_concat_last_kernel(%arg0: i32, %arg1: memref<16x32xf32, #tpu.memory_space<vmem>>, %arg2: memref<16x16xf32, #tpu.memory_space<vmem>>, %arg3: memref<16x48xf32, #tpu.memory_space<vmem>>, %arg4: memref<16x96xf32, #tpu.memory_space<vmem>>) attributes {dimension_semantics = [#tpu.dimension_semantics<parallel>], iteration_bounds = array<i64: 1>, scalar_prefetch = 0 : i64, scratch_operands = 0 : i64, tpu.core_type = #tpu.core_type<tc>, window_params = [{transform_indices = @transform_0, window_bounds = array<i64: 16, 32>}, {transform_indices = @transform_1, window_bounds = array<i64: 16, 16>}, {transform_indices = @transform_2, window_bounds = array<i64: 16, 48>}, {transform_indices = @transform_3, window_bounds = array<i64: 16, 96>}]} {
    %c0 = arith.constant 0 : index
    %c0_0 = arith.constant 0 : index
    %0 = vector.load %arg1[%c0, %c0_0] : memref<16x32xf32, #tpu.memory_space<vmem>>, vector<16x32xf32>
    %c0_1 = arith.constant 0 : index
    %c0_2 = arith.constant 0 : index
    %1 = vector.load %arg2[%c0_1, %c0_2] : memref<16x16xf32, #tpu.memory_space<vmem>>, vector<16x16xf32>
    %c0_3 = arith.constant 0 : index
    %c0_4 = arith.constant 0 : index
    %2 = vector.load %arg3[%c0_3, %c0_4] : memref<16x48xf32, #tpu.memory_space<vmem>>, vector<16x48xf32>
    %3 = tpu.concatenate %0, %1, %2 in 1 : vector<16x32xf32>, vector<16x16xf32>, vector<16x48xf32> -> vector<16x96xf32>
    %c0_5 = arith.constant 0 : index
    %c0_6 = arith.constant 0 : index
    %4 = vector.load %arg4[%c0_5, %c0_6] : memref<16x96xf32, #tpu.memory_space<vmem>>, vector<16x96xf32>
    tpu.vector_store %arg4[%c0_5, %c0_6], %3 {strides = array<i32>} : memref<16x96xf32, #tpu.memory_space<vmem>>, vector<16x96xf32>,
    return
  }
  func.func @transform_0(%arg0: i32) -> (i32, i32) {
    %c0_i32 = arith.constant 0 : i32
    %c0_i32_0 = arith.constant 0 : i32
    return %arg0, %c0_i32 : i32, i32
  }
  func.func @transform_1(%arg0: i32) -> (i32, i32) {
    %c0_i32 = arith.constant 0 : i32
    %c0_i32_0 = arith.constant 0 : i32
    return %arg0, %c0_i32 : i32, i32
  }
  func.func @transform_2(%arg0: i32) -> (i32, i32) {
    %c0_i32 = arith.constant 0 : i32
    %c0_i32_0 = arith.constant 0 : i32
    return %arg0, %c0_i32 : i32, i32
  }
  func.func @transform_3(%arg0: i32) -> (i32, i32) {
    %c0_i32 = arith.constant 0 : i32
    %c0_i32_0 = arith.constant 0 : i32
    return %arg0, %c0_i32 : i32, i32
  }
}

</mosaic_0001>

<bundles_post_ra>
// kernel: tpu_custom_call.1
= control target key start
LH: loop header
LB: loop body
LE: loop exit
PB: predicated region body
PF: predicated region fallthrough
CT: control target
= control target key end

     0   :  { %8 = vsyncpa [#allocation3], 0  ;;  %s302_s0 = inlined_call_operand.hbm [shape: f32[16,32], index: 0, kind: input, shape index: {}]   ;;  %s303_s1 = inlined_call_operand.hbm [shape: f32[16,16], index: 1, kind: input, shape index: {}]   ;;  %s304_s2 = inlined_call_operand.hbm [shape: f32[16,48], index: 2, kind: input, shape index: {}]   ;;  %s305_s3 = inlined_call_operand.hbm [shape: f32[16,96], index: 3, kind: output, shape index: {}]  }
   0x1   :  { %9 = vsyncpa [#allocation6], 0 }
   0x2   :  { %10 = vsyncpa [#allocation4], 0  ;;  %s207_s12 = smov [#allocation5]   ;;  %s208_s14 = smov [#allocation2]  }
   0x3   :  { %s28_s13 = sshll.u32 %s207_s12, 4  ;;  %s16_s15 = sshll.u32 %s208_s14, 4  ;;  %s29_s13 = int_to_ptr.vmem [resolvable:$true] %s28_s13  ;;  %s235_s15 = int_to_ptr.vmem [resolvable:$true] %s16_s15 }
   0x4   :  { %s113_s18 = scalar_lea.hbm %s303_s1, 256 }
   0x5   :  { %p114_p0 = scmp.ne.s32.totalorder %s303_s1, %s113_s18  ;;  %p117_p1 = scmp.lt.u32.totalorder %s113_s18, %s303_s1 }
   0x7   :  { %p119_p2 = pnand %p117_p1, %p114_p0 }
   0x9   :  { %122 = shalt.err (!%p119_p2)
}
   0xa   :  { %s123_s23 = scalar_lea.vmem %s29_s13, 256  ;;  %p128_p4 = scmp.lt.s32.totalorder %s29_s13, %s29_s13 }
   0xb   :  { %p124_p3 = scmp.ne.s32.totalorder %s29_s13, %s123_s23  ;;  %p129_p5 = scmp.lt.s32.totalorder %s123_s23, %s123_s23 }
   0xd   :  { %p130_p6 = por %p129_p5, %p128_p4 }
   0xf   :  { %p131_p7 = pnand %p130_p6, %p124_p3 }
  0x11   :  { %134 = shalt.err (!%p131_p7)
}
  0x12   :  { %s209_s24 = smov 128   ;;  %s210_s25 = smov 8  }
  0x13   :  { %34 = dma.hbm_to_vmem [thread:$0]  %s303_s1, 256, %s29_s13, [#allocation6], %s209_s24, %s209_s24, %s210_s25  }
  0x14   :  { %s135_s30 = scalar_lea.hbm %s302_s0, 256 }
  0x15   :  { %p136_p8 = scmp.ne.s32.totalorder %s302_s0, %s135_s30  ;;  %p139_p9 = scmp.lt.u32.totalorder %s135_s30, %s302_s0 }
  0x17   :  { %p141_p10 = pnand %p139_p9, %p136_p8 }
  0x19   :  { %144 = shalt.err (!%p141_p10)
}
  0x1a   :  { %s145_s8 = scalar_lea.vmem %s235_s15, 256  ;;  %p150_p12 = scmp.lt.s32.totalorder %s235_s15, %s235_s15 }
  0x1b   :  { %p146_p11 = scmp.ne.s32.totalorder %s235_s15, %s145_s8  ;;  %p151_p13 = scmp.lt.s32.totalorder %s145_s8, %s145_s8 }
  0x1d   :  { %p152_p0 = por %p151_p13, %p150_p12 }
  0x1f   :  { %p153_p1 = pnand %p152_p0, %p146_p11 }
  0x21   :  { %156 = shalt.err (!%p153_p1)
}
  0x22   :  { %22 = dma.hbm_to_vmem [thread:$0]  %s302_s0, 256, %s235_s15, [#allocation3], %s209_s24, %s209_s24, %s210_s25  }
  0x23   :  { %s211_s10 = smov [#allocation7]   ;;  %s157_s14 = scalar_lea.hbm %s304_s2, 256 }
  0x24   :  { %s40_s11 = sshll.u32 %s211_s10, 4  ;;  %p158_p2 = scmp.ne.s32.totalorder %s304_s2, %s157_s14  ;;  %s41_s11 = int_to_ptr.vmem [resolvable:$true] %s40_s11 }
  0x25   :  { %p161_p3 = scmp.lt.u32.totalorder %s157_s14, %s304_s2 }
  0x27   :  { %p163_p4 = pnand %p161_p3, %p158_p2 }
  0x29   :  { %166 = shalt.err (!%p163_p4)
}
  0x2a   :  { %s167_s20 = scalar_lea.vmem %s41_s11, 256  ;;  %p172_p6 = scmp.lt.s32.totalorder %s41_s11, %s41_s11 }
  0x2b   :  { %p168_p5 = scmp.ne.s32.totalorder %s41_s11, %s167_s20  ;;  %p173_p7 = scmp.lt.s32.totalorder %s167_s20, %s167_s20 }
  0x2d   :  { %p174_p8 = por %p173_p7, %p172_p6 }
  0x2f   :  { %p175_p9 = pnand %p174_p8, %p168_p5 }
  0x31   :  { %178 = shalt.err (!%p175_p9)
}
  0x32   :  { %46 = dma.hbm_to_vmem [thread:$0]  %s304_s2, 256, %s41_s11, [#allocation6], %s209_s24, %s209_s24, %s210_s25  }
  0x33   :  { %201 = dma.done.wait [#allocation3], 256  }
  0x34   :  { %202 = vsyncadd [#allocation3], 4294967040 }
  0x35   :  { %203 = dma.done.wait [#allocation6], 512  }
  0x36   :  { %204 = vsyncadd [#allocation6], 4294966784  ;;  %v58_v0 = vld [vmem:[#allocation5] sm:$0xff]  ;;  %v60_v1 = vld [vmem:[#allocation7] sm:$0xff]  ;;  %s212_s21 = smov 32   ;;  %s213_s22 = smov 48  }
  0x37   :  { %64 = vrot.lane.b32.xlu0 %v58_v0, %s212_s21  ;;  %72 = vrot.lane.b32.xlu1 %v60_v1, %s213_s22  ;;  %v59_v2 = vld [vmem:[#allocation5 + $0x8] sm:$0xff]  ;;  %v61_v3 = vld [vmem:[#allocation7 + $0x8] sm:$0xff]  ;;  %vm78_vm0 = vcmask 261120   ;;  %v56_v4 = vld [vmem:[#allocation2] sm:$0xff]  ;;  %vm81_vm1 = vcmask 392192   ;;  %vm84_vm2 = vcmask 785408  }
  0x38   :  { %v57_v9 = vld [vmem:[#allocation2 + $0x8] sm:$0xff]  ;;  %s214_s2 = smov [#allocation8]  }
  0x39   :  { %s92_s23 = sshll.u32 %s214_s2, 4  ;;  %s93_s23 = int_to_ptr.vmem [resolvable:$true] %s92_s23 }
  0x3a   :  { %s179_s26 = scalar_lea.vmem %s93_s23, 256  ;;  %p184_p11 = scmp.lt.s32.totalorder %s93_s23, %s93_s23 }
  0x3b   :  { %66 = vrot.lane.b32.xlu0 %v59_v2, %s212_s21  ;;  %74 = vrot.lane.b32.xlu1 %v61_v3, %s213_s22  ;;  %p180_p10 = scmp.ne.s32.totalorder %s93_s23, %s179_s26  ;;  %p185_p12 = scmp.lt.s32.totalorder %s179_s26, %s179_s26 }
  0x3d   :  { %p186_p13 = por %p185_p12, %p184_p11 }
  0x3f   :  { %p187_p0 = pnand %p186_p13, %p180_p10 }
  0xa9   :  { %v65_v5 = vpop.permute.xlu0 %64  ;;  %v73_v6 = vpop.permute.xlu1 %72 }
  0xaa   :  { %v79_v7 = vsel %vm78_vm0, %v56_v4, %v65_v5 }
  0xab   :  { %v82_v8 = vsel %vm81_vm1, %v79_v7, %v73_v6 }
  0xac   :  { %85 = vst.msk [vmem:[#allocation8] sm:$0xff] %vm84_vm2, %v82_v8 }
  0xad   :  { %v67_v10 = vpop.permute.xlu0 %66  ;;  %v75_v11 = vpop.permute.xlu1 %74 }
  0xae   :  { %v80_v12 = vsel %vm78_vm0, %v57_v9, %v67_v10 }
  0xaf   :  { %v83_v13 = vsel %vm81_vm1, %v80_v12, %v75_v11 }
  0xb0   :  { %86 = vst.msk [vmem:[#allocation8 + $0x8] sm:$0xff] %vm84_vm2, %v83_v13 }
  0xb1   :  { %190 = shalt.err (!%p187_p0)
}
  0xb2   :  { %s191_s29 = scalar_lea.hbm %s305_s3, 256 }
  0xb3   :  { %p192_p1 = scmp.ne.s32.totalorder %s305_s3, %s191_s29  ;;  %p195_p2 = scmp.lt.u32.totalorder %s191_s29, %s305_s3 }
  0xb5   :  { %p197_p3 = pnand %p195_p2, %p192_p1 }
  0xb7   :  { %200 = shalt.err (!%p197_p3)
}
  0xb8   :  { %98 = dma.vmem_to_hbm [thread:$0]  %s93_s23, 256, %s305_s3, [#allocation4], %s209_s24, %s209_s24, %s210_s25  }
  0xb9   :  { %205 = dma.done.wait [#allocation4], 256  }
  0xba   :  { %206 = vsyncadd [#allocation4], 4294967040 }
  0xbb   :  { %102 = vsyncpa [#allocation3], 1 }
  0xbc   :  { %103 = vsyncpa [#allocation6], 1 }
  0xbd   :  { %104 = vsyncpa [#allocation4], 1 }

</bundles_post_ra>
